<compile_context>
chip_gen: v7x
topology: tpu7x:2x2x1
jax: 0.10.0
libtpu: 0.0.40
codegen_flags: <defaults>
</compile_context>

<pallas_src>
import functools
import math

import jax
import jax.numpy as jnp
from jax.experimental import pallas as pl
from jax.experimental.pallas import tpu as pltpu


def _round_up(x, m):
    return (x + m - 1) // m * m


def _cdiv(a, b):
    return -(-a // b)


def _choose_tiling(n, gran, target, even_count=False):
    """Pick (tile, padded, count): tile % gran == 0, tile <= max(target, gran),
    padded = tile * count >= n, minimizing padding waste (ties -> fewer,
    larger tiles). With even_count, prefer an even tile count so the
    "parallel" row axis shards evenly across v7x's two TensorCores."""
    min_padded = _round_up(n, gran)
    target = max(gran, (target // gran) * gran)
    if min_padded <= target and not even_count:
        return min_padded, min_padded, 1
    base = _cdiv(min_padded, target)
    if even_count and min_padded > 256:
        base = max(base, 2)          # >=2 row tiles -> both v7x TCs stream HBM
    best = None
    for count in range(base, base + 9):
        if even_count and count > 1 and count % 2:
            continue                 # odd multi-tile counts unbalance megacore
        tile = _round_up(_cdiv(min_padded, count), gran)
        key = (tile * count, count)  # minimize padded bytes, then step count
        if best is None or key < best[0]:
            best = (key, tile, tile * count, count)
    return best[1], best[2], best[3]


# ---------------------------------------------------------------------------
# Dominant kernel: out = relu(adj @ h + bias), reduction over the k grid axis.
# ---------------------------------------------------------------------------
def _make_adj_h_kernel(tk, slice_h):
    def kernel(adj_ref, h_ref, b_ref, out_ref, acc_ref):
        k = pl.program_id(1)

        @pl.when(k == 0)
        def _init():
            acc_ref[...] = jnp.zeros_like(acc_ref)

        if slice_h:
            # h is fully VMEM-resident; take this step's (tk, F_out) stripe.
            start = pl.multiple_of(k * tk, 128)
            h_blk = h_ref[pl.ds(start, tk), :]
        else:
            h_blk = h_ref[...]

        acc_ref[...] += jnp.dot(adj_ref[...], h_blk,
                                preferred_element_type=jnp.float32)

        @pl.when(k == pl.num_programs(1) - 1)
        def _finalize():
            # Bias + ReLU only in the epilogue (hoisted out of the k loop).
            out_ref[...] = jnp.maximum(acc_ref[...] + b_ref[...], 0.0).astype(
                out_ref.dtype)

    return kernel


def _gcn_forward(adj, x, weight, bias, *, tm=512, tk=2048,
                 compute_dtype=jnp.bfloat16,
                 max_resident_h_bytes=8 * 1024 * 1024,
                 vmem_limit_bytes=48 * 1024 * 1024):
    """relu(adj @ x @ W + bias) computed as adj @ (x @ W), tiled for the MXU.

    compute_dtype: dtype of the dominant adj / h HBM streams fed to the MXU.
      bf16 (default) halves the bandwidth-bound adj traffic on v5e/v6e/v7x;
      accumulation is always f32. Pass adj pre-cast to compute_dtype when
      reusing it across layers to avoid the one-time conversion pass. Use
      jnp.float32 for bit-tighter results.
    """
    n = adj.shape[0]
    f_in, f_out = weight.shape
    assert adj.shape == (n, n)
    assert x.shape == (n, f_in)

    f32 = jnp.float32
    f_out_p = _round_up(f_out, 128)      # lane-dense output / h columns

    # Tiling: pad N only to small granularity and pick tiles that (nearly)
    # divide the padded sizes -> no round-up-to-tile blow-up for awkward N.
    tm, n_rows, num_i = _choose_tiling(n, 8, tm, even_count=True)
    tk, n_k, num_k = _choose_tiling(n, 128, tk)

    # h = x @ W is tiny relative to adj @ h; let XLA's MXU handle it.
    h = jnp.dot(x.astype(f32), weight.astype(f32), preferred_element_type=f32)
    h = jnp.pad(h, ((0, n_k - n), (0, f_out_p - f_out))).astype(compute_dtype)

    # adj: cast (fused under jit) and zero-pad only if actually needed.
    adj_c = adj.astype(compute_dtype)
    if (n_rows, n_k) != (n, n):
        adj_c = jnp.pad(adj_c, ((0, n_rows - n), (0, n_k - n)))

    b_p = jnp.pad(bias.astype(f32), (0, f_out_p - f_out)).reshape(1, f_out_p)

    elt = jnp.dtype(compute_dtype).itemsize
    h_bytes = n_k * f_out_p * elt
    h_resident = h_bytes <= max_resident_h_bytes
    if h_resident:
        # Constant block index -> DMA'd once, kept in VMEM for the whole grid.
        h_spec = pl.BlockSpec((n_k, f_out_p), lambda i, k: (0, 0))
    else:
        h_spec = pl.BlockSpec((tk, f_out_p), lambda i, k: (k, 0))
    slice_h = h_resident and num_k > 1

    cost = pl.CostEstimate(
        flops=2 * n_rows * n_k * f_out_p,
        transcendentals=0,
        bytes_accessed=(elt * n_rows * n_k
                        + elt * n_k * f_out_p * (1 if h_resident else num_i)
                        + 4 * n_rows * f_out_p
                        + 4 * f_out_p),
    )

    out_p = pl.pallas_call(
        _make_adj_h_kernel(tk, slice_h),
        out_shape=jax.ShapeDtypeStruct((n_rows, f_out_p), f32),
        grid_spec=pltpu.PrefetchScalarGridSpec(
            num_scalar_prefetch=0,
            grid=(num_i, num_k),                               # reduction last
            in_specs=[
                pl.BlockSpec((tm, tk), lambda i, k: (i, k)),   # adj tile
                h_spec,                                        # h (resident/stream)
                pl.BlockSpec((1, f_out_p), lambda i, k: (0, 0)),  # bias
            ],
            out_specs=pl.BlockSpec((tm, f_out_p), lambda i, k: (i, 0)),
            scratch_shapes=[pltpu.VMEM((tm, f_out_p), jnp.float32)],
        ),
        compiler_params=pltpu.CompilerParams(
            dimension_semantics=("parallel", "arbitrary"),
            vmem_limit_bytes=vmem_limit_bytes,
        ),
        cost_estimate=cost,
    )(adj_c, h, b_p)

    return out_p[:n, :f_out]


gcn_forward = jax.jit(
    _gcn_forward,
    static_argnames=("tm", "tk", "compute_dtype", "max_resident_h_bytes",
                     "vmem_limit_bytes"),
)


def xavier_uniform(key, fan_in, fan_out, dtype=jnp.float32):
    # Matches torch.nn.init.xavier_uniform_ (gain=1.0).
    bound = math.sqrt(6.0 / (fan_in + fan_out))
    return jax.random.uniform(
        key, (fan_in, fan_out), minval=-bound, maxval=bound, dtype=dtype
    )


if __name__ == "__main__":
    key = jax.random.PRNGKey(0)

    def run_case(case_key, n, f_in, f_out, *, random_bias=False,
                 atol, rtol, **kwargs):
        k_adj, k_x, k_w, k_b = jax.random.split(case_key, 4)
        a = jax.random.uniform(k_adj, (n, n), dtype=jnp.float32)
        adj = (a + a.T) * 0.5
        adj = adj / jnp.sum(adj, axis=-1, keepdims=True)       # row-normalized
        x = jax.random.normal(k_x, (n, f_in), dtype=jnp.float32)
        weight = xavier_uniform(k_w, f_in, f_out)
        if random_bias:
            bias = 0.1 * jax.random.normal(k_b, (f_out,), dtype=jnp.float32)
        else:
            bias = jnp.zeros((f_out,), dtype=jnp.float32)      # zeros_ init

        out = jax.block_until_ready(
            gcn_forward(adj, x, weight, bias, **kwargs))
        ref = jnp.maximum(adj @ x @ weight + bias, 0.0)
        assert out.shape == (n, f_out)
        max_err = float(jnp.max(jnp.abs(out - ref)))
        assert jnp.allclose(out, ref, atol=atol, rtol=rtol), max_err

    k1, k2, k3, k4 = jax.random.split(key, 4)

    # 1) Small graph, f32 path -> tight correctness check; single-tile grid.
    run_case(k1, n=16, f_in=32, f_out=8,
             compute_dtype=jnp.float32, atol=1e-4, rtol=1e-4)

    # 2) Default bf16 path: resident h, even row-tile split (2 x 320 rows).
    run_case(k2, n=640, f_in=96, f_out=72, random_bias=True,
             atol=5e-3, rtol=1e-2)

    # 3) Ragged N: multi row-tile x multi k-tile grid with VMEM-resident h
    #    (in-kernel k-striping of the resident block) and minimal padding.
    run_case(k3, n=520, f_in=64, f_out=40, random_bias=True,
             tm=128, tk=256, atol=5e-3, rtol=1e-2)

    # 4) Same shapes with the streamed-h fallback path forced.
    run_case(k4, n=520, f_in=64, f_out=40, random_bias=True,
             tm=128, tk=256, max_resident_h_bytes=0, atol=5e-3, rtol=1e-2)

    print("KERNEL_OK")
</pallas_src>

<mosaic_0001>
module attributes {stable_mosaic.version = 11 : i64} {
  func.func @kernel(%arg0: i32, %arg1: i32, %arg2: memref<16x128xf32, #tpu.memory_space<vmem>>, %arg3: memref<128x128xf32, #tpu.memory_space<vmem>>, %arg4: memref<1x128xf32, #tpu.memory_space<vmem>>, %arg5: memref<16x128xf32, #tpu.memory_space<vmem>>, %arg6: memref<16x128xf32, #tpu.memory_space<vmem>>) attributes {dimension_semantics = [#tpu.dimension_semantics<parallel>, #tpu.dimension_semantics<arbitrary>], iteration_bounds = array<i64: 1, 1>, scalar_prefetch = 0 : i64, scratch_operands = 1 : i64, tpu.core_type = #tpu.core_type<tc>, window_params = [{transform_indices = @transform_0, window_bounds = array<i64: 16, 128>}, {pipeline_mode = #tpu.pipeline_mode<synchronous>, transform_indices = @transform_1, window_bounds = array<i64: 128, 128>}, {pipeline_mode = #tpu.pipeline_mode<synchronous>, transform_indices = @transform_2, window_bounds = array<i64: 1, 128>}, {transform_indices = @transform_3, window_bounds = array<i64: 16, 128>}]} {
    %c0_i32 = arith.constant 0 : i32
    %0 = arith.cmpi eq, %arg1, %c0_i32 : i32
    %1 = arith.extui %0 : i1 to i32
    %c0_i32_0 = arith.constant 0 : i32
    %2 = arith.cmpi ne, %1, %c0_i32_0 : i32
    scf.if %2 {
      %cst_10 = arith.constant 0.000000e+00 : f32
      %12 = vector.broadcast %cst_10 : f32 to vector<16x128xf32>
      %c0_11 = arith.constant 0 : index
      %c0_12 = arith.constant 0 : index
      %13 = vector.load %arg6[%c0_11, %c0_12] : memref<16x128xf32, #tpu.memory_space<vmem>>, vector<16x128xf32>
      tpu.vector_store %arg6[%c0_11, %c0_12], %12 {strides = array<i32>} : memref<16x128xf32, #tpu.memory_space<vmem>>, vector<16x128xf32>,
    } else {
    }
    %c0 = arith.constant 0 : index
    %c0_1 = arith.constant 0 : index
    %3 = vector.load %arg3[%c0, %c0_1] : memref<128x128xf32, #tpu.memory_space<vmem>>, vector<128x128xf32>
    %c0_2 = arith.constant 0 : index
    %c0_3 = arith.constant 0 : index
    %4 = vector.load %arg6[%c0_2, %c0_3] : memref<16x128xf32, #tpu.memory_space<vmem>>, vector<16x128xf32>
    %c0_4 = arith.constant 0 : index
    %c0_5 = arith.constant 0 : index
    %5 = vector.load %arg2[%c0_4, %c0_5] : memref<16x128xf32, #tpu.memory_space<vmem>>, vector<16x128xf32>
    %cst = arith.constant dense<0.000000e+00> : vector<16x128xf32>
    %6 = tpu.matmul %5, %3, %cst {dimension_numbers = #tpu.dot_dimension_numbers<[1], [0], [0], [1], [0, 0, 1, 1], [], []>} : vector<16x128xf32>, vector<128x128xf32>, vector<16x128xf32> -> vector<16x128xf32>
    %7 = arith.addf %4, %6 : vector<16x128xf32>
    %c0_6 = arith.constant 0 : index
    %c0_7 = arith.constant 0 : index
    %8 = vector.load %arg6[%c0_6, %c0_7] : memref<16x128xf32, #tpu.memory_space<vmem>>, vector<16x128xf32>
    tpu.vector_store %arg6[%c0_6, %c0_7], %7 {strides = array<i32>} : memref<16x128xf32, #tpu.memory_space<vmem>>, vector<16x128xf32>,
    %c0_i32_8 = arith.constant 0 : i32
    %9 = arith.cmpi eq, %arg1, %c0_i32_8 : i32
    %10 = arith.extui %9 : i1 to i32
    %c0_i32_9 = arith.constant 0 : i32
    %11 = arith.cmpi ne, %10, %c0_i32_9 : i32
    scf.if %11 {
      %c0_10 = arith.constant 0 : index
      %c0_11 = arith.constant 0 : index
      %12 = vector.load %arg6[%c0_10, %c0_11] : memref<16x128xf32, #tpu.memory_space<vmem>>, vector<16x128xf32>
      %c0_12 = arith.constant 0 : index
      %c0_13 = arith.constant 0 : index
      %13 = vector.load %arg4[%c0_12, %c0_13] : memref<1x128xf32, #tpu.memory_space<vmem>>, vector<1x128xf32>
      %14 = vector.broadcast %13 : vector<1x128xf32> to vector<16x128xf32>
      %15 = arith.addf %12, %14 : vector<16x128xf32>
      %cst_14 = arith.constant 0.000000e+00 : f32
      %16 = vector.broadcast %cst_14 : f32 to vector<16x128xf32>
      %17 = arith.maximumf %15, %16 : vector<16x128xf32>
      %c0_15 = arith.constant 0 : index
      %c0_16 = arith.constant 0 : index
      %18 = vector.load %arg5[%c0_15, %c0_16] : memref<16x128xf32, #tpu.memory_space<vmem>>, vector<16x128xf32>
      tpu.vector_store %arg5[%c0_15, %c0_16], %17 {strides = array<i32>} : memref<16x128xf32, #tpu.memory_space<vmem>>, vector<16x128xf32>,
    } else {
    }
    return
  }
  func.func @transform_0(%arg0: i32, %arg1: i32) -> (i32, i32) {
    %c0_i32 = arith.constant 0 : i32
    return %arg0, %arg1 : i32, i32
  }
  func.func @transform_1(%arg0: i32, %arg1: i32) -> (i32, i32) {
    %c0_i32 = arith.constant 0 : i32
    %c0_i32_0 = arith.constant 0 : i32
    %c0_i32_1 = arith.constant 0 : i32
    return %c0_i32, %c0_i32_0 : i32, i32
  }
  func.func @transform_2(%arg0: i32, %arg1: i32) -> (i32, i32) {
    %c0_i32 = arith.constant 0 : i32
    %c0_i32_0 = arith.constant 0 : i32
    %c0_i32_1 = arith.constant 0 : i32
    return %c0_i32, %c0_i32_0 : i32, i32
  }
  func.func @transform_3(%arg0: i32, %arg1: i32) -> (i32, i32) {
    %c0_i32 = arith.constant 0 : i32
    %c0_i32_0 = arith.constant 0 : i32
    return %arg0, %c0_i32 : i32, i32
  }
}

</mosaic_0001>

<bundles_post_ra>
// kernel: _gcn_forward.1
= control target key start
LH: loop header
LB: loop body
LE: loop exit
PB: predicated region body
PF: predicated region fallthrough
CT: control target
= control target key end

     0   :  { %s310_s1 = inlined_call_operand.vmem [shape: f32[128,128], index: 1, kind: input, shape index: {}]   ;;  %s311_s0 = inlined_call_operand.vmem [shape: f32[16,128], index: 0, kind: input, shape index: {}]   ;;  %s312_s2 = inlined_call_operand.vmem [shape: f32[1,128], index: 2, kind: input, shape index: {}]   ;;  %s313_s3 = inlined_call_operand.vmem [shape: f32[16,128], index: 3, kind: output, shape index: {}]  }
   0x1   :  { %v20_v0 = vld [vmem:[%s310_s1] sm:$0xff]  ;;  %v21_v1 = vld [vmem:[%s310_s1 + $0x8] sm:$0xff]  ;;  %v22_v2 = vld [vmem:[%s310_s1 + $0x10] sm:$0xff] }
   0x2   :  { %v195_v3 = vpack.c.bf16 %v21_v1, %v20_v0  ;;  %v23_v4 = vld [vmem:[%s310_s1 + $0x18] sm:$0xff]  ;;  %v24_v6 = vld [vmem:[%s310_s1 + $0x20] sm:$0xff]  ;;  %v25_v7 = vld [vmem:[%s310_s1 + $0x28] sm:$0xff] }
   0x3   :  { %v199_v5 = vpack.c.bf16 %v23_v4, %v22_v2  ;;  %v203_v8 = vpack.c.bf16 %v25_v7, %v24_v6  ;;  %v38_v9 = vld [vmem:[%s311_s0] sm:$0xff]  ;;  %v26_v10 = vld [vmem:[%s310_s1 + $0x30] sm:$0xff]  ;;  %v27_v11 = vld [vmem:[%s310_s1 + $0x38] sm:$0xff] }
   0x4   :  { %196 = vmatprep.subr.bf16.mxu0 %v195_v3  ;;  %192 = vmatprep.mubr.f32.mxu0 %v38_v9  ;;  %v207_v12 = vpack.c.bf16 %v27_v11, %v26_v10  ;;  %v28_v13 = vld [vmem:[%s310_s1 + $0x40] sm:$0xff]  ;;  %v29_v14 = vld [vmem:[%s310_s1 + $0x48] sm:$0xff]  ;;  %v30_v16 = vld [vmem:[%s310_s1 + $0x50] sm:$0xff] }
   0x5   :  { %198 = vmatpush3.bf16.msra.mxu0 %v195_v3  ;;  %v211_v15 = vpack.c.bf16 %v29_v14, %v28_v13  ;;  %v31_v17 = vld [vmem:[%s310_s1 + $0x58] sm:$0xff]  ;;  %v32_v19 = vld [vmem:[%s310_s1 + $0x60] sm:$0xff]  ;;  %v33_v20 = vld [vmem:[%s310_s1 + $0x68] sm:$0xff] }
   0x6   :  { %200 = vmatprep.subr.bf16.mxu0 %v199_v5  ;;  %v215_v18 = vpack.c.bf16 %v31_v17, %v30_v16  ;;  %v219_v21 = vpack.c.bf16 %v33_v20, %v32_v19  ;;  %v34_v22 = vld [vmem:[%s310_s1 + $0x70] sm:$0xff]  ;;  %v35_v23 = vld [vmem:[%s310_s1 + $0x78] sm:$0xff]  ;;  %v39_v25 = vld [vmem:[%s311_s0 + $0x8] sm:$0xff] }
   0x7   :  { %v223_v24 = vpack.c.bf16 %v35_v23, %v34_v22  ;;  %v141_v26 = vld [vmem:[%s312_s2] ss:$0 sm:$0xff] }
   0x9   :  { %202 = vmatpush3.bf16.msra.mxu0 %v199_v5 }
   0xa   :  { %204 = vmatprep.subr.bf16.mxu0 %v203_v8 }
   0xd   :  { %206 = vmatpush3.bf16.msra.mxu0 %v203_v8 }
   0xe   :  { %208 = vmatprep.subr.bf16.mxu0 %v207_v12 }
  0x11   :  { %210 = vmatpush3.bf16.msra.mxu0 %v207_v12 }
  0x12   :  { %212 = vmatprep.subr.bf16.mxu0 %v211_v15 }
  0x15   :  { %214 = vmatpush3.bf16.msra.mxu0 %v211_v15 }
  0x16   :  { %216 = vmatprep.subr.bf16.mxu0 %v215_v18 }
  0x19   :  { %218 = vmatpush3.bf16.msra.mxu0 %v215_v18 }
  0x1a   :  { %220 = vmatprep.subr.bf16.mxu0 %v219_v21 }
  0x1d   :  { %222 = vmatpush3.bf16.msra.mxu0 %v219_v21 }
  0x1e   :  { %224 = vmatprep.subr.bf16.mxu0 %v223_v24 }
  0x21   :  { %226 = vmatpush3.bf16.msra.mxu0 %v223_v24 }
  0x24   :  { %193 = vmatmul.mubr.f32.vlgmr.msra.gmra.mrb[0].mxu0 %v39_v25 }
  0xf7   :  { %v194_v27 = vpop.f32.mrb[0].mxu0 }
  0xf8   :  { %v132_v28 = vadd.f32 %v194_v27, %v141_v26  ;;  %v106_v29 = vpop.f32.mrb[1].mxu0 }
  0xf9   :  { %v131_v30 = vadd.f32 %v141_v26, %v106_v29 }
  0xfa   :  { %v134_v31 = vmax.f32 %v132_v28, 0.0 }
  0xfb   :  { %v133_v32 = vmax.f32 %v131_v30, 0.0 }
  0xfc   :  { %136 = vst [vmem:[%s313_s3 + $0x8] sm:$0xff] %v134_v31 }
  0xfd   :  { %135 = vst [vmem:[%s313_s3] sm:$0xff] %v133_v32 }

</bundles_post_ra>
